<compile_context>
chip_gen: v5e
topology: v5e:2x2
jax: 0.10.0
libtpu: 0.0.40
codegen_flags: <defaults>
</compile_context>

<pallas_src>
import functools

import jax
import jax.numpy as jnp
from jax.experimental import pallas as pl
from jax.experimental.pallas import tpu as pltpu

LANES = 128
SUBLANES = 8


def _round_up(n, m):
    return ((n + m - 1) // m) * m


def actor_kernel(x_ref, w1_ref, b1_ref, w2_ref, b2_ref, w3_ref, b3_ref, o_ref):
    # Layer 1: Linear(input_size, 64) + ReLU   (MXU matmul, f32 accumulate)
    h1 = jnp.dot(x_ref[...], w1_ref[...], preferred_element_type=jnp.float32)
    h1 = jnp.maximum(h1 + b1_ref[...], 0.0)
    # Layer 2: Linear(64, 32) + ReLU
    h2 = jnp.dot(h1, w2_ref[...], preferred_element_type=jnp.float32)
    h2 = jnp.maximum(h2 + b2_ref[...], 0.0)
    # Output layer: Linear(32, output_size_padded_to_128)  (no activation)
    out = jnp.dot(h2, w3_ref[...], preferred_element_type=jnp.float32) + b3_ref[...]
    # Lane-dense (128-wide) unmasked store.
    o_ref[...] = out.astype(o_ref.dtype)


@functools.partial(jax.jit, static_argnames=("block_batch",))
def actor_forward(x, params, block_batch=512):
    w1, b1, w2, b2, w3, b3 = params
    batch, in_features = x.shape
    h1_dim = w1.shape[1]
    h2_dim = w2.shape[1]
    out_features = w3.shape[1]

    # Pad the output layer to a full 128-lane register width (zeros -> padded
    # columns are exactly zero and get sliced away).
    out_padded = _round_up(max(out_features, LANES), LANES)
    w3p = jnp.zeros((h2_dim, out_padded), w3.dtype).at[:, :out_features].set(w3)
    b3p = jnp.zeros((1, out_padded), b3.dtype).at[:, :out_features].set(b3)

    # Batch tile: multiple of 8 sublanes; pad batch rows up to a tile multiple.
    tb = min(block_batch, _round_up(batch, SUBLANES))
    padded_batch = _round_up(batch, tb)
    if padded_batch != batch:
        x = jnp.zeros((padded_batch, in_features), x.dtype).at[:batch, :].set(x)
    grid = (padded_batch // tb,)

    out_padded_arr = pl.pallas_call(
        actor_kernel,
        out_shape=jax.ShapeDtypeStruct((padded_batch, out_padded), x.dtype),
        grid=grid,
        in_specs=[
            # x: streamed per batch tile.
            pl.BlockSpec((tb, in_features), lambda i: (i, 0)),
            # Weights / biases: constant block index -> stay resident in VMEM.
            pl.BlockSpec((in_features, h1_dim), lambda i: (0, 0)),
            pl.BlockSpec((1, h1_dim), lambda i: (0, 0)),
            pl.BlockSpec((h1_dim, h2_dim), lambda i: (0, 0)),
            pl.BlockSpec((1, h2_dim), lambda i: (0, 0)),
            pl.BlockSpec((h2_dim, out_padded), lambda i: (0, 0)),
            pl.BlockSpec((1, out_padded), lambda i: (0, 0)),
        ],
        out_specs=pl.BlockSpec((tb, out_padded), lambda i: (i, 0)),
        compiler_params=pltpu.CompilerParams(
            dimension_semantics=("parallel",),
        ),
    )(x, w1, b1, w2, b2, w3p, b3p)

    return out_padded_arr[:batch, :out_features]


def init_actor_params(key, input_size, output_size, dtype=jnp.float32):
    """Deterministic PyTorch-style Linear init: U(-1/sqrt(fan_in), 1/sqrt(fan_in))."""
    def linear(key, fan_in, fan_out):
        kw, kb = jax.random.split(key)
        bound = 1.0 / jnp.sqrt(float(fan_in))
        # Stored transposed relative to PyTorch: (in, out) so y = x @ W + b.
        w = jax.random.uniform(kw, (fan_in, fan_out), dtype, -bound, bound)
        b = jax.random.uniform(kb, (1, fan_out), dtype, -bound, bound)
        return w, b

    k1, k2, k3 = jax.random.split(key, 3)
    w1, b1 = linear(k1, input_size, 64)
    w2, b2 = linear(k2, 64, 32)
    w3, b3 = linear(k3, 32, output_size)
    return (w1, b1, w2, b2, w3, b3)


def actor_reference(x, params):
    """Plain-JAX reference of the PyTorch forward pass for validation."""
    w1, b1, w2, b2, w3, b3 = params
    h = jax.nn.relu(x @ w1 + b1)
    h = jax.nn.relu(h @ w2 + b2)
    return h @ w3 + b3


if __name__ == "__main__":
    key = jax.random.PRNGKey(0)
    k_params, k_x1, k_x2 = jax.random.split(key, 3)

    input_size = 16   # observation space size
    output_size = 8   # number of actions
    params = init_actor_params(k_params, input_size, output_size)

    # Small per-step batch.
    batch = 8
    x = jax.random.normal(k_x1, (batch, input_size), dtype=jnp.float32)
    out = jax.block_until_ready(actor_forward(x, params))
    ref = actor_reference(x, params)
    assert out.shape == (batch, output_size)
    assert jnp.allclose(out, ref, atol=1e-5, rtol=1e-5), "Pallas output mismatch vs reference"

    # Larger, non-tile-aligned batch to exercise the grid + padding path.
    batch2 = 200
    x2 = jax.random.normal(k_x2, (batch2, input_size), dtype=jnp.float32)
    out2 = jax.block_until_ready(actor_forward(x2, params, block_batch=128))
    ref2 = actor_reference(x2, params)
    assert out2.shape == (batch2, output_size)
    assert jnp.allclose(out2, ref2, atol=1e-5, rtol=1e-5), "Pallas output mismatch vs reference (gridded)"

    print("KERNEL_OK")
</pallas_src>

<mosaic_0001>
module attributes {stable_mosaic.version = 11 : i64} {
  func.func @actor_kernel(%arg0: i32, %arg1: memref<8x16xf32, #tpu.memory_space<vmem>>, %arg2: memref<16x64xf32, #tpu.memory_space<vmem>>, %arg3: memref<1x64xf32, #tpu.memory_space<vmem>>, %arg4: memref<64x32xf32, #tpu.memory_space<vmem>>, %arg5: memref<1x32xf32, #tpu.memory_space<vmem>>, %arg6: memref<32x128xf32, #tpu.memory_space<vmem>>, %arg7: memref<1x128xf32, #tpu.memory_space<vmem>>, %arg8: memref<8x128xf32, #tpu.memory_space<vmem>>) attributes {dimension_semantics = [#tpu.dimension_semantics<parallel>], iteration_bounds = array<i64: 1>, scalar_prefetch = 0 : i64, scratch_operands = 0 : i64, tpu.core_type = #tpu.core_type<tc>, window_params = [{transform_indices = @transform_0, window_bounds = array<i64: 8, 16>}, {pipeline_mode = #tpu.pipeline_mode<synchronous>, transform_indices = @transform_1, window_bounds = array<i64: 16, 64>}, {pipeline_mode = #tpu.pipeline_mode<synchronous>, transform_indices = @transform_2, window_bounds = array<i64: 1, 64>}, {pipeline_mode = #tpu.pipeline_mode<synchronous>, transform_indices = @transform_3, window_bounds = array<i64: 64, 32>}, {pipeline_mode = #tpu.pipeline_mode<synchronous>, transform_indices = @transform_4, window_bounds = array<i64: 1, 32>}, {pipeline_mode = #tpu.pipeline_mode<synchronous>, transform_indices = @transform_5, window_bounds = array<i64: 32, 128>}, {pipeline_mode = #tpu.pipeline_mode<synchronous>, transform_indices = @transform_6, window_bounds = array<i64: 1, 128>}, {transform_indices = @transform_7, window_bounds = array<i64: 8, 128>}]} {
    %c0 = arith.constant 0 : index
    %c0_0 = arith.constant 0 : index
    %0 = vector.load %arg1[%c0, %c0_0] : memref<8x16xf32, #tpu.memory_space<vmem>>, vector<8x16xf32>
    %c0_1 = arith.constant 0 : index
    %c0_2 = arith.constant 0 : index
    %1 = vector.load %arg2[%c0_1, %c0_2] : memref<16x64xf32, #tpu.memory_space<vmem>>, vector<16x64xf32>
    %cst = arith.constant dense<0.000000e+00> : vector<8x64xf32>
    %2 = tpu.matmul %0, %1, %cst {dimension_numbers = #tpu.dot_dimension_numbers<[1], [0], [0], [1], [0, 0, 1, 1], [], []>} : vector<8x16xf32>, vector<16x64xf32>, vector<8x64xf32> -> vector<8x64xf32>
    %c0_3 = arith.constant 0 : index
    %c0_4 = arith.constant 0 : index
    %3 = vector.load %arg3[%c0_3, %c0_4] : memref<1x64xf32, #tpu.memory_space<vmem>>, vector<1x64xf32>
    %4 = vector.broadcast %3 : vector<1x64xf32> to vector<8x64xf32>
    %5 = arith.addf %2, %4 : vector<8x64xf32>
    %cst_5 = arith.constant 0.000000e+00 : f32
    %6 = vector.broadcast %cst_5 : f32 to vector<8x64xf32>
    %7 = arith.maximumf %5, %6 : vector<8x64xf32>
    %c0_6 = arith.constant 0 : index
    %c0_7 = arith.constant 0 : index
    %8 = vector.load %arg4[%c0_6, %c0_7] : memref<64x32xf32, #tpu.memory_space<vmem>>, vector<64x32xf32>
    %cst_8 = arith.constant dense<0.000000e+00> : vector<8x32xf32>
    %9 = tpu.matmul %7, %8, %cst_8 {dimension_numbers = #tpu.dot_dimension_numbers<[1], [0], [0], [1], [0, 0, 1, 1], [], []>} : vector<8x64xf32>, vector<64x32xf32>, vector<8x32xf32> -> vector<8x32xf32>
    %c0_9 = arith.constant 0 : index
    %c0_10 = arith.constant 0 : index
    %10 = vector.load %arg5[%c0_9, %c0_10] : memref<1x32xf32, #tpu.memory_space<vmem>>, vector<1x32xf32>
    %11 = vector.broadcast %10 : vector<1x32xf32> to vector<8x32xf32>
    %12 = arith.addf %9, %11 : vector<8x32xf32>
    %cst_11 = arith.constant 0.000000e+00 : f32
    %13 = vector.broadcast %cst_11 : f32 to vector<8x32xf32>
    %14 = arith.maximumf %12, %13 : vector<8x32xf32>
    %c0_12 = arith.constant 0 : index
    %c0_13 = arith.constant 0 : index
    %15 = vector.load %arg6[%c0_12, %c0_13] : memref<32x128xf32, #tpu.memory_space<vmem>>, vector<32x128xf32>
    %cst_14 = arith.constant dense<0.000000e+00> : vector<8x128xf32>
    %16 = tpu.matmul %14, %15, %cst_14 {dimension_numbers = #tpu.dot_dimension_numbers<[1], [0], [0], [1], [0, 0, 1, 1], [], []>} : vector<8x32xf32>, vector<32x128xf32>, vector<8x128xf32> -> vector<8x128xf32>
    %c0_15 = arith.constant 0 : index
    %c0_16 = arith.constant 0 : index
    %17 = vector.load %arg7[%c0_15, %c0_16] : memref<1x128xf32, #tpu.memory_space<vmem>>, vector<1x128xf32>
    %18 = vector.broadcast %17 : vector<1x128xf32> to vector<8x128xf32>
    %19 = arith.addf %16, %18 : vector<8x128xf32>
    %c0_17 = arith.constant 0 : index
    %c0_18 = arith.constant 0 : index
    %20 = vector.load %arg8[%c0_17, %c0_18] : memref<8x128xf32, #tpu.memory_space<vmem>>, vector<8x128xf32>
    tpu.vector_store %arg8[%c0_17, %c0_18], %19 {strides = array<i32>} : memref<8x128xf32, #tpu.memory_space<vmem>>, vector<8x128xf32>,
    return
  }
  func.func @transform_0(%arg0: i32) -> (i32, i32) {
    %c0_i32 = arith.constant 0 : i32
    %c0_i32_0 = arith.constant 0 : i32
    return %arg0, %c0_i32 : i32, i32
  }
  func.func @transform_1(%arg0: i32) -> (i32, i32) {
    %c0_i32 = arith.constant 0 : i32
    %c0_i32_0 = arith.constant 0 : i32
    %c0_i32_1 = arith.constant 0 : i32
    return %c0_i32, %c0_i32_0 : i32, i32
  }
  func.func @transform_2(%arg0: i32) -> (i32, i32) {
    %c0_i32 = arith.constant 0 : i32
    %c0_i32_0 = arith.constant 0 : i32
    %c0_i32_1 = arith.constant 0 : i32
    return %c0_i32, %c0_i32_0 : i32, i32
  }
  func.func @transform_3(%arg0: i32) -> (i32, i32) {
    %c0_i32 = arith.constant 0 : i32
    %c0_i32_0 = arith.constant 0 : i32
    %c0_i32_1 = arith.constant 0 : i32
    return %c0_i32, %c0_i32_0 : i32, i32
  }
  func.func @transform_4(%arg0: i32) -> (i32, i32) {
    %c0_i32 = arith.constant 0 : i32
    %c0_i32_0 = arith.constant 0 : i32
    %c0_i32_1 = arith.constant 0 : i32
    return %c0_i32, %c0_i32_0 : i32, i32
  }
  func.func @transform_5(%arg0: i32) -> (i32, i32) {
    %c0_i32 = arith.constant 0 : i32
    %c0_i32_0 = arith.constant 0 : i32
    %c0_i32_1 = arith.constant 0 : i32
    return %c0_i32, %c0_i32_0 : i32, i32
  }
  func.func @transform_6(%arg0: i32) -> (i32, i32) {
    %c0_i32 = arith.constant 0 : i32
    %c0_i32_0 = arith.constant 0 : i32
    %c0_i32_1 = arith.constant 0 : i32
    return %c0_i32, %c0_i32_0 : i32, i32
  }
  func.func @transform_7(%arg0: i32) -> (i32, i32) {
    %c0_i32 = arith.constant 0 : i32
    %c0_i32_0 = arith.constant 0 : i32
    return %arg0, %c0_i32 : i32, i32
  }
}

</mosaic_0001>

<bundles_post_ra>
// kernel: actor_forward.1
= control target key start
LH: loop header
LB: loop body
LE: loop exit
PB: predicated region body
PF: predicated region fallthrough
CT: control target
= control target key end

     0   :  { %vm34_vm0 = vcmask 130048   ;;  %s276_s0 = inlined_call_operand.vmem [shape: f32[8,16], index: 0, kind: input, shape index: {}]   ;;  %s277_s1 = inlined_call_operand.vmem [shape: f32[16,64], index: 1, kind: input, shape index: {}]   ;;  %s278_s2 = inlined_call_operand.vmem [shape: f32[1,64], index: 2, kind: input, shape index: {}]   ;;  %s279_s3 = inlined_call_operand.vmem [shape: f32[64,32], index: 3, kind: input, shape index: {}]   ;;  %s280_s4 = inlined_call_operand.vmem [shape: f32[1,32], index: 4, kind: input, shape index: {}]   ;;  %s281_s5 = inlined_call_operand.vmem [shape: f32[32,128], index: 5, kind: input, shape index: {}]   ;;  %s282_s6 = inlined_call_operand.vmem [shape: f32[1,128], index: 6, kind: input, shape index: {}]   ;;  %s283_s7 = inlined_call_operand.hbm [shape: f32[8,128], index: 7, kind: output, shape index: {}]  }
   0x1   :  { %v29_v0 = vld [vmem:[%s277_s1 + $0x8] sm:$0xff]  ;;  %v28_v1 = vld [vmem:[%s277_s1] sm:$0xff]  ;;  %v66_v3 = vld [vmem:[%s279_s3 + $0x38] sm:$0xff] }
   0x2   :  { %52 = vmatpush.msra.mxu0 %v29_v0  ;;  %v27_v2 = vld [vmem:[%s276_s0] sm:$0xff]  ;;  %v65_v4 = vld [vmem:[%s279_s3 + $0x30] sm:$0xff]  ;;  %83 = vmatpush.msra.mxu1 %v66_v3  ;;  %v64_v5 = vld [vmem:[%s279_s3 + $0x28] sm:$0xff] }
   0x4   :  { %53 = vmatpush.msra.mxu0 %v28_v1  ;;  %84 = vmatpush.msra.mxu1 %v65_v4 }
   0x5   :  { %145 = vmatmul.msk.f32.vlgmr.msra.gmra.mxu0 %vm34_vm0, %v27_v2 }
   0x6   :  { %12 = vsyncpa [#allocation3], 0  ;;  %v63_v6 = vld [vmem:[%s279_s3 + $0x20] sm:$0xff]  ;;  %85 = vmatpush.msra.mxu1 %v64_v5  ;;  %v62_v7 = vld [vmem:[%s279_s3 + $0x18] sm:$0xff]  ;;  %vm71_vm1 = vcmask 523264   ;;  %vm104_vm2 = vcmask 261120  }
   0x7   :  { %v61_v8 = vld [vmem:[%s279_s3 + $0x10] sm:$0xff]  ;;  %v60_v9 = vld [vmem:[%s279_s3 + $0x8] sm:$0xff]  ;;  %v59_v10 = vld [vmem:[%s279_s3] sm:$0xff]  ;;  %s178_s10 = smov [#allocation2]  }
   0x8   :  { %86 = vmatpush.msra.mxu1 %v63_v6  ;;  %v99_v11 = vld [vmem:[%s281_s5 + $0x18] sm:$0xff]  ;;  %v149_v12 = vld [vmem:[%s278_s2] ss:$0 sm:$0xff]  ;;  %v98_v16 = vld [vmem:[%s281_s5 + $0x10] sm:$0xff]  ;;  %s134_s11 = sshll.u32 %s178_s10, 4  ;;  %s135_s11 = int_to_ptr.vmem [resolvable:$true] %s134_s11 }
   0x9   :  { %120 = vmatpush.msra.mxu2 %v99_v11  ;;  %v97_v17 = vld [vmem:[%s281_s5 + $0x8] sm:$0xff]  ;;  %v96_v18 = vld [vmem:[%s281_s5] sm:$0xff]  ;;  %s136_s5 = sshll.u32 %s283_s7, 4  ;;  %s137_s5 = int_to_ptr.hbm [resolvable:$true] %s136_s5 }
   0xa   :  { %87 = vmatpush.msra.mxu1 %v62_v7  ;;  %v150_v19 = vld [vmem:[%s280_s4] ss:$0 sm:$0xff] }
   0xb   :  { %121 = vmatpush.msra.mxu2 %v98_v16  ;;  %v151_v23 = vld [vmem:[%s282_s6] ss:$0 sm:$0xff] }
   0xc   :  { %88 = vmatpush.msra.mxu1 %v61_v8 }
   0xd   :  { %122 = vmatpush.msra.mxu2 %v97_v17 }
   0xe   :  { %89 = vmatpush.msra.mxu1 %v60_v9 }
   0xf   :  { %123 = vmatpush.msra.mxu2 %v96_v18 }
  0x10   :  { %90 = vmatpush.msra.mxu1 %v59_v10 }
  0x82   :  { %v55_v13 = vpop.f32.mrf.mxu0 }
  0x83   :  { %v56_v14 = vadd.f32 %v149_v12, %v55_v13 }
  0x85   :  { %v58_v15 = vmax.f32 %v56_v14, 0.0 }
  0x87   :  { %146 = vmatmul.msk.f32.vlgmr.msra.gmra.mxu1 %vm71_vm1, %v58_v15 }
 0x104   :  { %v92_v20 = vpop.f32.mrf.mxu1 }
 0x105   :  { %v93_v21 = vadd.f32 %v150_v19, %v92_v20 }
 0x107   :  { %v95_v22 = vmax.f32 %v93_v21, 0.0 }
 0x109   :  { %147 = vmatmul.msk.f32.vlgmr.msra.gmra.mxu2 %vm104_vm2, %v95_v22 }
 0x18c   :  { %v125_v24 = vpop.f32.mrf.mxu2 }
 0x18d   :  { %v126_v25 = vadd.f32 %v151_v23, %v125_v24 }
 0x18f   :  { %128 = vst [vmem:[#allocation2] sm:$0xff] %v126_v25 }
 0x190   :  { %139 = dma.vmem_to_hbm [thread:$0]  %s135_s11, 128, %s137_s5, [#allocation3]  }
 0x191   :  { %176 = dma.done.wait [#allocation3], 128  }
 0x192   :  { %177 = vsyncadd [#allocation3], 4294967168 }
 0x193   :  { %144 = vsyncpa [#allocation3], 1 }

</bundles_post_ra>
